<compile_context>
chip_gen: v5e
topology: v5e:2x2
jax: 0.10.0
libtpu: 0.0.40
codegen_flags: <defaults>
</compile_context>

<pallas_src>
import jax
import jax.numpy as jnp
from jax.experimental import pallas as pl
from jax.experimental.pallas import tpu as pltpu


def _round_up(x, m):
    return ((x + m - 1) // m) * m


def _vmem_capacity_bytes():
    """Physical VMEM per TensorCore (128 MiB on v5e/v6e, 64 MiB on v7x)."""
    try:
        return int(pltpu.get_tpu_info().vmem_capacity_bytes)
    except Exception:
        return 64 << 20  # conservative fallback (v7x-sized)


# --------------------------------------------------------------------------
# Kernels
# --------------------------------------------------------------------------
def _resident_kernel(x_ref, w12_ref, w3_ref, w4_ref, o_ref):
    """Whole FFN fused for one row tile; all weights resident in VMEM.

    x_ref:   (tm, Ep)     token rows
    w12_ref: (Ep, 2*Hp)   fused [W1^T | W2^T]
    w3_ref:  (Hp, Ep)
    w4_ref:  (Ep, Bp)
    o_ref:   (tm, Bp)
    """
    hp = w3_ref.shape[0]
    x = x_ref[...]

    # Fused gate/up projection: one weight-stationary MXU pass over x.
    h12 = jnp.dot(x, w12_ref[...], preferred_element_type=jnp.float32)
    h1 = h12[:, :hp]                     # lane-aligned split (hp % 128 == 0)
    h2 = h12[:, hp:]
    h = (h1 * jax.nn.sigmoid(h1)) * h2   # silu(fc1) * fc2, f32

    g = jnp.dot(h.astype(w3_ref.dtype), w3_ref[...],
                preferred_element_type=jnp.float32)
    g = g * jax.nn.sigmoid(g)            # silu(fc3), f32

    y = jnp.dot(g.astype(w4_ref.dtype), w4_ref[...],
                preferred_element_type=jnp.float32)
    o_ref[...] = y.astype(o_ref.dtype)


def _htiled_kernel(x_ref, w12_ref, w3_ref, w4_ref, o_ref, acc_ref):
    """Hidden-dim streamed variant for when weights don't fit VMEM (v7x).

    Grid = (row tiles, H tiles); H is the innermost ("arbitrary") axis.
    x_ref:   (tm, Ep)
    w12_ref: (1, Ep, 2*tH)   fused [W1^T | W2^T] chunk for this H tile
    w3_ref:  (1, tH, Ep)
    w4_ref:  (Ep, Bp)        resident (Buffered(1))
    o_ref:   (tm, Bp)        written only on the last H step
    acc_ref: (tm, Ep) f32    scratch accumulator for h @ W3^T
    """
    th = w3_ref.shape[1]
    h_idx = pl.program_id(1)

    @pl.when(h_idx == 0)
    def _():
        acc_ref[...] = jnp.zeros_like(acc_ref)

    x = x_ref[...]
    h12 = jnp.dot(x, w12_ref[0], preferred_element_type=jnp.float32)
    h1 = h12[:, :th]
    h2 = h12[:, th:]
    h = (h1 * jax.nn.sigmoid(h1)) * h2
    acc_ref[...] += jnp.dot(h.astype(w3_ref.dtype), w3_ref[0],
                            preferred_element_type=jnp.float32)

    @pl.when(h_idx == pl.num_programs(1) - 1)
    def _():
        g = acc_ref[...]
        g = g * jax.nn.sigmoid(g)
        y = jnp.dot(g.astype(w4_ref.dtype), w4_ref[...],
                    preferred_element_type=jnp.float32)
        o_ref[...] = y.astype(o_ref.dtype)


# --------------------------------------------------------------------------
# One-time weight preparation (hoisted out of the per-call path)
# --------------------------------------------------------------------------
def prepare_bottleneck_ffn(w1_t, w2_t, w3_t, w4_t, *, tm=None, th=None,
                           force_h_tiling=False, compute_dtype=None):
    """Pad / fuse the weights once and pick a tiling strategy.

    w*_t are pre-transposed nn.Linear weights with shape [in_dim, out_dim].
    compute_dtype: optionally cast weights (and activations at call time),
    e.g. jnp.bfloat16 for full MXU throughput; accumulation stays f32.
    """
    if compute_dtype is not None:
        w1_t = w1_t.astype(compute_dtype)
        w2_t = w2_t.astype(compute_dtype)
        w3_t = w3_t.astype(compute_dtype)
        w4_t = w4_t.astype(compute_dtype)

    E, H = w1_t.shape
    Bn = w4_t.shape[1]
    Ep = _round_up(E, 128)
    Hp = _round_up(H, 128)
    Bp = _round_up(Bn, 128)

    cap = _vmem_capacity_bytes()
    budget = cap - (16 << 20)            # headroom for Mosaic internal scratch
    if tm is None:
        tm = 512 if cap >= (96 << 20) else 256   # v5e/v6e vs v7x defaults

    wb = jnp.dtype(w1_t.dtype).itemsize

    def _resident_bytes(tm_):
        # Weights single-buffered (Buffered(1)); x/out double-buffered;
        # f32 intermediates for one row tile.  Activations counted at 4B
        # (worst case) so the estimate is conservative.
        weight_bytes = (Ep * 2 * Hp + Hp * Ep + Ep * Bp) * wb
        io_bytes = 2 * tm_ * (Ep + Bp) * 4
        interm = tm_ * (2 * Hp + Hp + Ep + Bp) * 4
        return weight_bytes + io_bytes + interm

    use_h_tiling = bool(force_h_tiling) or _resident_bytes(tm) > budget

    w1p = jnp.zeros((Ep, Hp), w1_t.dtype).at[:E, :H].set(w1_t)
    w2p = jnp.zeros((Ep, Hp), w2_t.dtype).at[:E, :H].set(w2_t)
    w3p = jnp.zeros((Hp, Ep), w3_t.dtype).at[:H, :E].set(w3_t)
    w4p = jnp.zeros((Ep, Bp), w4_t.dtype).at[:E, :Bn].set(w4_t)

    if use_h_tiling:
        if th is None:
            th = 128
            for cand in range(min(Hp, 512), 127, -128):
                if Hp % cand == 0:
                    th = cand
                    break
        assert th % 128 == 0 and Hp % th == 0, "th must be a 128-multiple dividing Hp"
        nH = Hp // th
        # Per-H-tile fused [W1_tile | W2_tile] blocks: (nH, Ep, 2*th).
        w12 = jnp.concatenate(
            [w1p.reshape(Ep, nH, th), w2p.reshape(Ep, nH, th)], axis=-1
        ).transpose(1, 0, 2)
        w3_prep = w3p.reshape(nH, th, Ep)
    else:
        th = None
        w12 = jnp.concatenate([w1p, w2p], axis=1)       # (Ep, 2*Hp)
        w3_prep = w3p

    return dict(E=E, H=H, Bn=Bn, Ep=Ep, Hp=Hp, Bp=Bp, tm=tm, th=th,
                use_h_tiling=use_h_tiling, vmem_budget=budget,
                weight_dtype=w1_t.dtype, w12=w12, w3=w3_prep, w4=w4p)


# --------------------------------------------------------------------------
# Per-call forward
# --------------------------------------------------------------------------
def _forward(x, prep, *, single_buffer_weights=True):
    *lead, E = x.shape
    assert E == prep["E"], "embedding dim mismatch"
    M = 1
    for d in lead:
        M *= d

    Ep, Hp, Bp = prep["Ep"], prep["Hp"], prep["Bp"]
    H, Bn = prep["H"], prep["Bn"]
    io_dtype = prep["weight_dtype"]
    budget = prep["vmem_budget"]

    # Row tiling: multiple of 8, and >=2 grid steps when possible so the
    # "parallel" axis shards across both v7x TensorCores.
    rows = max(_round_up(M, 8), 8)
    tm_eff = min(prep["tm"], rows)
    if rows > 8 and rows <= tm_eff:
        tm_eff = _round_up(-(-rows // 2), 8)
    Mp = _round_up(M, tm_eff)

    # Only activation padding happens per call; weights were prepared once.
    x2 = jnp.zeros((Mp, Ep), io_dtype).at[:M, :E].set(
        x.reshape(M, E).astype(io_dtype))

    wb = jnp.dtype(io_dtype).itemsize
    xb = wb
    cost = pl.CostEstimate(
        flops=2 * M * (E * 2 * H + H * E + E * Bn),
        transcendentals=M * (H + E),
        bytes_accessed=(M * E + M * Bn) * xb + (E * 2 * H + H * E + E * Bn) * wb,
    )

    def _const_spec(shape, index_map):
        # Constant-index (resident) operands: single-buffer to halve VMEM.
        if single_buffer_weights:
            return pl.BlockSpec(shape, index_map, pipeline_mode=pl.Buffered(1))
        return pl.BlockSpec(shape, index_map)

    if not prep["use_h_tiling"]:
        weight_bytes = (Ep * 2 * Hp + Hp * Ep + Ep * Bp) * wb
        if not single_buffer_weights:
            weight_bytes *= 2
        io_bytes = 2 * tm_eff * (Ep + Bp) * xb
        interm_bytes = tm_eff * (2 * Hp + Hp + Ep + Bp) * 4
        vmem_needed = weight_bytes + io_bytes + interm_bytes
        if vmem_needed > budget:
            raise ValueError(
                "resident-weight working set exceeds the VMEM budget; "
                "re-prepare with force_h_tiling=True")
        vmem_limit = int(min(max(vmem_needed + (4 << 20), 32 << 20), budget))

        out = pl.pallas_call(
            _resident_kernel,
            out_shape=jax.ShapeDtypeStruct((Mp, Bp), io_dtype),
            grid=(Mp // tm_eff,),
            in_specs=[
                pl.BlockSpec((tm_eff, Ep), lambda i: (i, 0)),     # token rows
                _const_spec((Ep, 2 * Hp), lambda i: (0, 0)),      # resident weights
                _const_spec((Hp, Ep), lambda i: (0, 0)),
                _const_spec((Ep, Bp), lambda i: (0, 0)),
            ],
            out_specs=pl.BlockSpec((tm_eff, Bp), lambda i: (i, 0)),
            compiler_params=pltpu.CompilerParams(
                dimension_semantics=("parallel",),
                vmem_limit_bytes=vmem_limit,
            ),
            cost_estimate=cost,
        )(x2, prep["w12"], prep["w3"], prep["w4"])
    else:
        th = prep["th"]
        nH = Hp // th
        weight_bytes = (2 * (Ep * 2 * th + th * Ep) + Ep * Bp) * wb
        if not single_buffer_weights:
            weight_bytes += Ep * Bp * wb
        io_bytes = 2 * tm_eff * (Ep + Bp) * xb
        interm_bytes = tm_eff * (2 * th + th + Bp) * 4
        scratch_bytes = tm_eff * Ep * 4
        vmem_needed = weight_bytes + io_bytes + interm_bytes + scratch_bytes
        vmem_limit = int(min(max(vmem_needed + (4 << 20), 32 << 20), budget))

        out = pl.pallas_call(
            _htiled_kernel,
            out_shape=jax.ShapeDtypeStruct((Mp, Bp), io_dtype),
            grid=(Mp // tm_eff, nH),
            in_specs=[
                pl.BlockSpec((tm_eff, Ep), lambda i, h: (i, 0)),
                pl.BlockSpec((1, Ep, 2 * th), lambda i, h: (h, 0, 0)),
                pl.BlockSpec((1, th, Ep), lambda i, h: (h, 0, 0)),
                _const_spec((Ep, Bp), lambda i, h: (0, 0)),
            ],
            out_specs=pl.BlockSpec((tm_eff, Bp), lambda i, h: (i, 0)),
            scratch_shapes=[pltpu.VMEM((tm_eff, Ep), jnp.float32)],
            compiler_params=pltpu.CompilerParams(
                dimension_semantics=("parallel", "arbitrary"),
                vmem_limit_bytes=vmem_limit,
            ),
            cost_estimate=cost,
        )(x2, prep["w12"], prep["w3"], prep["w4"])

    return out[:M, :Bn].reshape(*lead, Bn).astype(x.dtype)


def bottleneck_feed_forward(x, prep):
    """Forward pass.  Tries single-buffered weight specs first; falls back to
    default double-buffering if this jax build rejects pl.Buffered(1)."""
    try:
        out = _forward(x, prep, single_buffer_weights=True)
        jax.block_until_ready(out)
        return out
    except Exception:
        return _forward(x, prep, single_buffer_weights=False)


# --------------------------------------------------------------------------
# Pure-JAX reference
# --------------------------------------------------------------------------
def reference(x, w1_t, w2_t, w3_t, w4_t):
    xf = x.astype(jnp.float32)
    h1 = xf @ w1_t.astype(jnp.float32)
    h2 = xf @ w2_t.astype(jnp.float32)
    h = jax.nn.silu(h1) * h2
    h3 = h @ w3_t.astype(jnp.float32)
    g = jax.nn.silu(h3)
    return (g @ w4_t.astype(jnp.float32)).astype(x.dtype)


if __name__ == "__main__":
    key = jax.random.PRNGKey(0)

    def make_params(k, E, H, Bn, dtype, scale=0.05):
        k1, k2, k3, k4 = jax.random.split(k, 4)
        # nn.Linear(in, out, bias=False) weight is [out, in]; store transposed [in, out].
        w1_t = (scale * jax.random.normal(k1, (E, H))).astype(dtype)
        w2_t = (scale * jax.random.normal(k2, (E, H))).astype(dtype)
        w3_t = (scale * jax.random.normal(k3, (H, E))).astype(dtype)
        w4_t = (scale * jax.random.normal(k4, (E, Bn))).astype(dtype)
        return w1_t, w2_t, w3_t, w4_t

    batch, seq = 2, 8

    # --- Config A: small shapes, resident-weight path -----------------------
    E, H, Bn, dt = 32, 64, 16, jnp.float32
    kx, kw, key = jax.random.split(key, 3)
    x = jax.random.normal(kx, (batch, seq, E), dtype=dt)
    params = make_params(kw, E, H, Bn, dt)
    prep = prepare_bottleneck_ffn(*params)
    out = jax.block_until_ready(bottleneck_feed_forward(x, prep))
    ref = reference(x, *params)
    assert out.shape == (batch, seq, Bn)
    assert jnp.allclose(out, ref, atol=1e-5, rtol=1e-5), "resident path mismatch"

    # --- Config B: forced hidden-dim-tiled path (v7x-style fallback) --------
    E2, H2, Bn2 = 32, 256, 16
    kx2, kw2, key = jax.random.split(key, 3)
    x_b = jax.random.normal(kx2, (batch, seq, E2), dtype=dt)
    params_b = make_params(kw2, E2, H2, Bn2, dt)
    prep_b = prepare_bottleneck_ffn(*params_b, force_h_tiling=True, th=128)
    out_b = jax.block_until_ready(bottleneck_feed_forward(x_b, prep_b))
    ref_b = reference(x_b, *params_b)
    assert out_b.shape == (batch, seq, Bn2)
    assert jnp.allclose(out_b, ref_b, atol=1e-5, rtol=1e-5), "H-tiled path mismatch"

    print("KERNEL_OK")
</pallas_src>

<mosaic_0001>
module attributes {stable_mosaic.version = 11 : i64} {
  func.func @_resident_kernel(%arg0: i32, %arg1: memref<8x128xf32, #tpu.memory_space<vmem>>, %arg2: memref<128x256xf32, #tpu.memory_space<vmem>>, %arg3: memref<128x128xf32, #tpu.memory_space<vmem>>, %arg4: memref<128x128xf32, #tpu.memory_space<vmem>>, %arg5: memref<8x128xf32, #tpu.memory_space<vmem>>) attributes {dimension_semantics = [#tpu.dimension_semantics<parallel>], iteration_bounds = array<i64: 2>, scalar_prefetch = 0 : i64, scratch_operands = 0 : i64, tpu.core_type = #tpu.core_type<tc>, window_params = [{transform_indices = @transform_0, window_bounds = array<i64: 8, 128>}, {pipeline_mode = #tpu.pipeline_mode<synchronous>, transform_indices = @transform_1, window_bounds = array<i64: 128, 256>}, {pipeline_mode = #tpu.pipeline_mode<synchronous>, transform_indices = @transform_2, window_bounds = array<i64: 128, 128>}, {pipeline_mode = #tpu.pipeline_mode<synchronous>, transform_indices = @transform_3, window_bounds = array<i64: 128, 128>}, {transform_indices = @transform_4, window_bounds = array<i64: 8, 128>}]} {
    %c0 = arith.constant 0 : index
    %c0_0 = arith.constant 0 : index
    %0 = vector.load %arg1[%c0, %c0_0] : memref<8x128xf32, #tpu.memory_space<vmem>>, vector<8x128xf32>
    %c0_1 = arith.constant 0 : index
    %c0_2 = arith.constant 0 : index
    %1 = vector.load %arg2[%c0_1, %c0_2] : memref<128x256xf32, #tpu.memory_space<vmem>>, vector<128x256xf32>
    %cst = arith.constant dense<0.000000e+00> : vector<8x256xf32>
    %2 = tpu.matmul %0, %1, %cst {dimension_numbers = #tpu.dot_dimension_numbers<[1], [0], [0], [1], [0, 0, 1, 1], [], []>} : vector<8x128xf32>, vector<128x256xf32>, vector<8x256xf32> -> vector<8x256xf32>
    %3 = vector.extract_strided_slice %2 {offsets = [0, 0], sizes = [8, 128], strides = [1, 1]} : vector<8x256xf32> to vector<8x128xf32>
    %4 = vector.extract_strided_slice %2 {offsets = [0, 128], sizes = [8, 128], strides = [1, 1]} : vector<8x256xf32> to vector<8x128xf32>
    %5 = arith.negf %3 : vector<8x128xf32>
    %6 = math.exp %5 : vector<8x128xf32>
    %cst_3 = arith.constant 1.000000e+00 : f32
    %7 = vector.broadcast %cst_3 : f32 to vector<8x128xf32>
    %8 = arith.addf %7, %6 : vector<8x128xf32>
    %9 = arith.divf %7, %8 : vector<8x128xf32>
    %10 = arith.mulf %3, %9 : vector<8x128xf32>
    %11 = arith.mulf %10, %4 : vector<8x128xf32>
    %c0_4 = arith.constant 0 : index
    %c0_5 = arith.constant 0 : index
    %12 = vector.load %arg3[%c0_4, %c0_5] : memref<128x128xf32, #tpu.memory_space<vmem>>, vector<128x128xf32>
    %cst_6 = arith.constant dense<0.000000e+00> : vector<8x128xf32>
    %13 = tpu.matmul %11, %12, %cst_6 {dimension_numbers = #tpu.dot_dimension_numbers<[1], [0], [0], [1], [0, 0, 1, 1], [], []>} : vector<8x128xf32>, vector<128x128xf32>, vector<8x128xf32> -> vector<8x128xf32>
    %14 = arith.negf %13 : vector<8x128xf32>
    %15 = math.exp %14 : vector<8x128xf32>
    %cst_7 = arith.constant 1.000000e+00 : f32
    %16 = vector.broadcast %cst_7 : f32 to vector<8x128xf32>
    %17 = arith.addf %16, %15 : vector<8x128xf32>
    %18 = arith.divf %16, %17 : vector<8x128xf32>
    %19 = arith.mulf %13, %18 : vector<8x128xf32>
    %c0_8 = arith.constant 0 : index
    %c0_9 = arith.constant 0 : index
    %20 = vector.load %arg4[%c0_8, %c0_9] : memref<128x128xf32, #tpu.memory_space<vmem>>, vector<128x128xf32>
    %cst_10 = arith.constant dense<0.000000e+00> : vector<8x128xf32>
    %21 = tpu.matmul %19, %20, %cst_10 {dimension_numbers = #tpu.dot_dimension_numbers<[1], [0], [0], [1], [0, 0, 1, 1], [], []>} : vector<8x128xf32>, vector<128x128xf32>, vector<8x128xf32> -> vector<8x128xf32>
    %c0_11 = arith.constant 0 : index
    %c0_12 = arith.constant 0 : index
    %22 = vector.load %arg5[%c0_11, %c0_12] : memref<8x128xf32, #tpu.memory_space<vmem>>, vector<8x128xf32>
    tpu.vector_store %arg5[%c0_11, %c0_12], %21 {strides = array<i32>} : memref<8x128xf32, #tpu.memory_space<vmem>>, vector<8x128xf32>,
    return
  }
  func.func @transform_0(%arg0: i32) -> (i32, i32) {
    %c0_i32 = arith.constant 0 : i32
    %c0_i32_0 = arith.constant 0 : i32
    return %arg0, %c0_i32 : i32, i32
  }
  func.func @transform_1(%arg0: i32) -> (i32, i32) {
    %c0_i32 = arith.constant 0 : i32
    %c0_i32_0 = arith.constant 0 : i32
    %c0_i32_1 = arith.constant 0 : i32
    return %c0_i32, %c0_i32_0 : i32, i32
  }
  func.func @transform_2(%arg0: i32) -> (i32, i32) {
    %c0_i32 = arith.constant 0 : i32
    %c0_i32_0 = arith.constant 0 : i32
    %c0_i32_1 = arith.constant 0 : i32
    return %c0_i32, %c0_i32_0 : i32, i32
  }
  func.func @transform_3(%arg0: i32) -> (i32, i32) {
    %c0_i32 = arith.constant 0 : i32
    %c0_i32_0 = arith.constant 0 : i32
    %c0_i32_1 = arith.constant 0 : i32
    return %c0_i32, %c0_i32_0 : i32, i32
  }
  func.func @transform_4(%arg0: i32) -> (i32, i32) {
    %c0_i32 = arith.constant 0 : i32
    %c0_i32_0 = arith.constant 0 : i32
    return %arg0, %c0_i32 : i32, i32
  }
}

module attributes {stable_mosaic.version = 11 : i64} {
  func.func @_resident_kernel(%arg0: i32, %arg1: memref<8x128xf32, #tpu.memory_space<vmem>>, %arg2: memref<128x256xf32, #tpu.memory_space<vmem>>, %arg3: memref<128x128xf32, #tpu.memory_space<vmem>>, %arg4: memref<128x128xf32, #tpu.memory_space<vmem>>, %arg5: memref<8x128xf32, #tpu.memory_space<vmem>>) attributes {dimension_semantics = [#tpu.dimension_semantics<parallel>], iteration_bounds = array<i64: 2>, scalar_prefetch = 0 : i64, scratch_operands = 0 : i64, tpu.core_type = #tpu.core_type<tc>, window_params = [{transform_indices = @transform_0, window_bounds = array<i64: 8, 128>}, {pipeline_mode = #tpu.pipeline_mode<synchronous>, transform_indices = @transform_1, window_bounds = array<i64: 128, 256>}, {pipeline_mode = #tpu.pipeline_mode<synchronous>, transform_indices = @transform_2, window_bounds = array<i64: 128, 128>}, {pipeline_mode = #tpu.pipeline_mode<synchronous>, transform_indices = @transform_3, window_bounds = array<i64: 128, 128>}, {transform_indices = @transform_4, window_bounds = array<i64: 8, 128>}]} {
    %c0 = arith.constant 0 : index
    %c0_0 = arith.constant 0 : index
    %0 = vector.load %arg1[%c0, %c0_0] : memref<8x128xf32, #tpu.memory_space<vmem>>, vector<8x128xf32>
    %c0_1 = arith.constant 0 : index
    %c0_2 = arith.constant 0 : index
    %1 = vector.load %arg2[%c0_1, %c0_2] : memref<128x256xf32, #tpu.memory_space<vmem>>, vector<128x256xf32>
    %cst = arith.constant dense<0.000000e+00> : vector<8x256xf32>
    %2 = tpu.matmul %0, %1, %cst {dimension_numbers = #tpu.dot_dimension_numbers<[1], [0], [0], [1], [0, 0, 1, 1], [], []>} : vector<8x128xf32>, vector<128x256xf32>, vector<8x256xf32> -> vector<8x256xf32>
    %3 = vector.extract_strided_slice %2 {offsets = [0, 0], sizes = [8, 128], strides = [1, 1]} : vector<8x256xf32> to vector<8x128xf32>
    %4 = vector.extract_strided_slice %2 {offsets = [0, 128], sizes = [8, 128], strides = [1, 1]} : vector<8x256xf32> to vector<8x128xf32>
    %5 = arith.negf %3 : vector<8x128xf32>
    %6 = math.exp %5 : vector<8x128xf32>
    %cst_3 = arith.constant 1.000000e+00 : f32
    %7 = vector.broadcast %cst_3 : f32 to vector<8x128xf32>
    %8 = arith.addf %7, %6 : vector<8x128xf32>
    %9 = arith.divf %7, %8 : vector<8x128xf32>
    %10 = arith.mulf %3, %9 : vector<8x128xf32>
    %11 = arith.mulf %10, %4 : vector<8x128xf32>
    %c0_4 = arith.constant 0 : index
    %c0_5 = arith.constant 0 : index
    %12 = vector.load %arg3[%c0_4, %c0_5] : memref<128x128xf32, #tpu.memory_space<vmem>>, vector<128x128xf32>
    %cst_6 = arith.constant dense<0.000000e+00> : vector<8x128xf32>
    %13 = tpu.matmul %11, %12, %cst_6 {dimension_numbers = #tpu.dot_dimension_numbers<[1], [0], [0], [1], [0, 0, 1, 1], [], []>} : vector<8x128xf32>, vector<128x128xf32>, vector<8x128xf32> -> vector<8x128xf32>
    %14 = arith.negf %13 : vector<8x128xf32>
    %15 = math.exp %14 : vector<8x128xf32>
    %cst_7 = arith.constant 1.000000e+00 : f32
    %16 = vector.broadcast %cst_7 : f32 to vector<8x128xf32>
    %17 = arith.addf %16, %15 : vector<8x128xf32>
    %18 = arith.divf %16, %17 : vector<8x128xf32>
    %19 = arith.mulf %13, %18 : vector<8x128xf32>
    %c0_8 = arith.constant 0 : index
    %c0_9 = arith.constant 0 : index
    %20 = vector.load %arg4[%c0_8, %c0_9] : memref<128x128xf32, #tpu.memory_space<vmem>>, vector<128x128xf32>
    %cst_10 = arith.constant dense<0.000000e+00> : vector<8x128xf32>
    %21 = tpu.matmul %19, %20, %cst_10 {dimension_numbers = #tpu.dot_dimension_numbers<[1], [0], [0], [1], [0, 0, 1, 1], [], []>} : vector<8x128xf32>, vector<128x128xf32>, vector<8x128xf32> -> vector<8x128xf32>
    %c0_11 = arith.constant 0 : index
    %c0_12 = arith.constant 0 : index
    %22 = vector.load %arg5[%c0_11, %c0_12] : memref<8x128xf32, #tpu.memory_space<vmem>>, vector<8x128xf32>
    tpu.vector_store %arg5[%c0_11, %c0_12], %21 {strides = array<i32>} : memref<8x128xf32, #tpu.memory_space<vmem>>, vector<8x128xf32>,
    return
  }
  func.func @transform_0(%arg0: i32) -> (i32, i32) {
    %c0_i32 = arith.constant 0 : i32
    %c0_i32_0 = arith.constant 0 : i32
    return %arg0, %c0_i32 : i32, i32
  }
  func.func @transform_1(%arg0: i32) -> (i32, i32) {
    %c0_i32 = arith.constant 0 : i32
    %c0_i32_0 = arith.constant 0 : i32
    %c0_i32_1 = arith.constant 0 : i32
    return %c0_i32, %c0_i32_0 : i32, i32
  }
  func.func @transform_2(%arg0: i32) -> (i32, i32) {
    %c0_i32 = arith.constant 0 : i32
    %c0_i32_0 = arith.constant 0 : i32
    %c0_i32_1 = arith.constant 0 : i32
    return %c0_i32, %c0_i32_0 : i32, i32
  }
  func.func @transform_3(%arg0: i32) -> (i32, i32) {
    %c0_i32 = arith.constant 0 : i32
    %c0_i32_0 = arith.constant 0 : i32
    %c0_i32_1 = arith.constant 0 : i32
    return %c0_i32, %c0_i32_0 : i32, i32
  }
  func.func @transform_4(%arg0: i32) -> (i32, i32) {
    %c0_i32 = arith.constant 0 : i32
    %c0_i32_0 = arith.constant 0 : i32
    return %arg0, %c0_i32 : i32, i32
  }
}

</mosaic_0001>

<bundles_post_ra>
// kernel: tpu_custom_call.1
= control target key start
LH: loop header
LB: loop body
LE: loop exit
PB: predicated region body
PF: predicated region fallthrough
CT: control target
= control target key end

     0   :  { %9 = vsyncpa [#allocation3], 0  ;;  %s1067_s0 = inlined_call_operand.hbm [shape: f32[16,128], index: 0, kind: input, shape index: {}]   ;;  %s1068_s1 = inlined_call_operand.hbm [shape: f32[128,256], index: 1, kind: input, shape index: {}]   ;;  %s1069_s2 = inlined_call_operand.hbm [shape: f32[128,128], index: 2, kind: input, shape index: {}]   ;;  %s1070_s3 = inlined_call_operand.hbm [shape: f32[128,128], index: 3, kind: input, shape index: {}]   ;;  %s1071_s4 = inlined_call_operand.hbm [shape: f32[16,128], index: 4, kind: output, shape index: {}]  }
   0x1   :  { %11 = vsyncpa [#allocation3 + $0x1], 0 }
   0x2   :  { %12 = vsyncpa [#allocation6], 0 }
   0x3   :  { %13 = vsyncpa [#allocation9], 0 }
   0x4   :  { %14 = vsyncpa [#allocation4], 0 }
   0x5   :  { %16 = vsyncpa [#allocation4 + $0x1], 0  ;;  %s904_s15 = smov 0   ;;  %s906_s16 = smov 0  }
   0x6   :  { %s908_s17 = smov 0   ;;  %s910_s18 = smov 0  }
   0x7 LB: > { %s153_s21 = sshll.u32 %s1068_s1, 4  ;;  %s928_s22 = sadd.s32 4294967295, %s870_s18   ;;  %s870_s18 = sphi %s910_s18, %s1082_s18   ;;  %s866_s17 = sphi %s908_s17, %s1081_s17   ;;  %s862_s16 = sphi %s906_s16, %s1080_s16   ;;  %s858_s15 = sphi %s904_s15, %s1079_s15   ;;  %s154_s21 = int_to_ptr.hbm [resolvable:$true] %s153_s21 }
   0x8   : > { %p568_p0 = scmp.ge.s32.totalorder %s870_s18, 1  ;;  %p43_p1 = scmp.eq.s32.totalorder %s928_s22, 0 }
   0x9   : > { %p142_p2 = scmp.lt.s32.totalorder %s870_s18, 3  ;;  %s872_s24 = smov [#allocation5]  }
   0xa   : > { %s155_s25 = sshll.u32 %s872_s24, 4  ;;  %s167_s28 = sshll.u32 %s1069_s2, 4  ;;  %s156_s25 = int_to_ptr.vmem [resolvable:$true] %s155_s25  ;;  %s168_s28 = int_to_ptr.hbm [resolvable:$true] %s167_s28 }
   0xb   : > { %p933_p3 = pnand %p568_p0, %p142_p2  ;;  %s873_s30 = smov [#allocation7]  }
   0xc   : > { %s169_s5 = sshll.u32 %s873_s30, 4  ;;  %s874_s6 = smov 256   ;;  %s170_s5 = int_to_ptr.vmem [resolvable:$true] %s169_s5 }
   0xd   : > { %p603_p4 = pneg %p933_p3  ;;  %s875_s7 = smov 16  }
   0xe   : > { %s876_s8 = smov 128   ;;  %s877_s9 = smov 8  }
   0xf   : > { %p945_p6 = pnand %p603_p4, %p43_p1  ;;  %s181_s12 = sshll.u32 %s1070_s3, 4  ;;  %s182_s12 = int_to_ptr.hbm [resolvable:$true] %s181_s12 }
  0x10   : > { %s878_s13 = smov [#allocation8]   ;;  %s567_s19 = sadd.s32 4294967294, %s870_s18  }
  0x11   : > { %606 = dma.hbm_to_vmem [thread:$0]  (!%p945_p6), %s154_s21, 4096, %s156_s25, [#allocation6], %s874_s6, %s874_s6, %s875_s7  }
  0x12   : > { %609 = dma.hbm_to_vmem [thread:$0]  (!%p945_p6), %s168_s28, 2048, %s170_s5, [#allocation6], %s876_s8, %s876_s8, %s877_s9  }
  0x13   : > { %s183_s14 = sshll.u32 %s878_s13, 4  ;;  %s960_s20 = sadd.s32 1, %s870_s18   ;;  %s184_s14 = int_to_ptr.vmem [resolvable:$true] %s183_s14 }
  0x14   : > { %612 = dma.hbm_to_vmem [thread:$0]  (!%p945_p6), %s182_s12, 2048, %s184_s14, [#allocation9], %s876_s8, %s876_s8, %s877_s9  }
  0x15   : > { %s29_s21 = sadd.s32 1, %s866_s17  ;;  %s26_s24 = ssub.s32 %s870_s18, %s960_s20 }
  0x16   : > { %p36_p7 = scmp.ne.s32.totalorder %s866_s17, %s862_s16  ;;  %p27_p8 = scmp.eq.s32.totalorder %s26_s24, 0 }
  0x17   : > { %p37_p9 = scmp.eq.s32.totalorder %s870_s18, 0  ;;  %p42_p10 = scmp.ne.s32.totalorder %s862_s16, %s858_s15 }
  0x18   : > { %p129_p11 = scmp.eq.s32.totalorder %s928_s22, 1  ;;  %p135_p0 = scmp.eq.s32.totalorder %s567_s19, 1 }
  0x19   : > { %s972_s25 = scalar_select %p27_p8, %s866_s17, %s29_s21  }
  0x1a   : > { %p976_p12 = por %p43_p1, %p42_p10  ;;  %p980_p13 = por %p129_p11, %p36_p7 }
  0x1b   : > { %p38_p2 = por %p37_p9, %p36_p7  ;;  %s197_s28 = sand.u32 1, %s866_s17  }
  0x1c   : > { %p985_p4 = por %p135_p0, %p42_p10  ;;  %p624_p6 = scmp.lt.s32.totalorder %s870_s18, 2 }
  0x1d   : > { %s573_s30 = sshll.u32 %s197_s28, 3  ;;  %s574_s5 = sshll.u32 %s870_s18, 3 }
  0x1e   : > { %s205_s8 = scalar_lea.hbm %s1067_s0, %s574_s5  ;;  %s201_s10 = scalar_lea.vmem [#allocation2], %s573_s30 }
  0x1f   : > { %s207_s9 = sshll.u32 %s205_s8, 4  ;;  %s209_s11 = sshll.u32 %s201_s10, 4  ;;  %s208_s9 = int_to_ptr.hbm [resolvable:$true] %s207_s9  ;;  %s210_s11 = int_to_ptr.vmem [resolvable:$true] %s209_s11 }
  0x20   : > { %p994_p8 = pnand %p624_p6, %p38_p2  ;;  %s198_s13 = scalar_lea.sflag [#allocation3], %s197_s28 }
  0x21   : > { %s766_s14 = sshra.s32 %s208_s9, 4  ;;  %s773_s30 = scalar_lea.hbm %s1067_s0, 16  ;;  %s767_s14 = int_to_ptr.hbm [resolvable:$true] %s766_s14 }
  0x22   : > { %s768_s19 = scalar_lea.hbm %s767_s14, 8  ;;  %p770_p9 = pneg %p994_p8 }
  0x23   : > { %p769_p7 = scmp.ne.s32.totalorder %s767_s14, %s768_s19  ;;  %p774_p0 = scmp.lt.s32.totalorder %s767_s14, %s1067_s0 }
  0x24   : > { %p775_p2 = scmp.lt.s32.totalorder %s773_s30, %s768_s19 }
  0x25   : > { %p771_p10 = pnand %p770_p9, %p769_p7 }
  0x26   : > { %p776_p6 = por %p775_p2, %p774_p0 }
  0x27   : > { %p772_p11 = pneg %p771_p10 }
  0x29   : > { %p777_p5 = pnand %p776_p6, %p772_p11 }
  0x2b   : > { %780 = shalt.err (!%p777_p5)
}
  0x2c   : > { %616 = dma.hbm_to_vmem [thread:$0]  (!%p994_p8), %s208_s9, 128, %s210_s11, %s198_s13  }
  0x2d   : > { %218 = sbr.rel (%p933_p3) target bundleno = 542 (0x21e), region = 36  ;;  %s1011_s28 = sand.u32 (!%p933_p3), 1, %s862_s16  }
  0x2e   : > { %s576_s7 = sshll.u32 (!%p933_p3), %s1011_s28, 3  ;;  %s221_s8 = scalar_lea.sflag (!%p933_p3), [#allocation3], %s1011_s28 }
  0x2f   : > { %s1017_s10 = scalar_lea.vmem (!%p933_p3), [#allocation2], %s576_s7 }
  0x32   : > { %841 = dma.done.wait (%p976_p12), %s221_s8, 128  }
  0x33   : > { %843 = vsyncadd (%p976_p12), %s221_s8, 4294967168 }
  0x34   : > { %845 = dma.done.wait (%p43_p1), [#allocation6], 6144  }
  0x35   : > { %847 = vsyncadd (%p43_p1), [#allocation6], 4294961152 }
  0x36   : > { %849 = dma.done.wait (%p43_p1), [#allocation9], 2048  }
  0x37   : > { %851 = vsyncadd (%p43_p1), [#allocation9], 4294965248  ;;  %v296_v0 = vld [vmem:[#allocation5 + $0xf0] sm:$0xff]  ;;  %v294_v1 = vld [vmem:[#allocation5 + $0xe0] sm:$0xff]  ;;  %s584_s23 = sshll.u32 %s928_s22, 3  ;;  %s264_s12 = scalar_lea.vmem [#allocation10], %s576_s7 }
  0x38   : > { %298 = vmatpush.msra.mxu0 %v296_v0  ;;  %v292_v2 = vld [vmem:[#allocation5 + $0xd0] sm:$0xff]  ;;  %v290_v3 = vld [vmem:[#allocation5 + $0xc0] sm:$0xff]  ;;  %v297_v4 = vld [vmem:[#allocation5 + $0xf8] sm:$0xff]  ;;  %s463_s11 = scalar_lea.hbm %s1071_s4, %s584_s23  ;;  %s465_s13 = sshll.u32 %s264_s12, 4  ;;  %s466_s13 = int_to_ptr.vmem [resolvable:$true] %s465_s13 }
  0x39   : > { %v288_v5 = vld [vmem:[#allocation5 + $0xb0] sm:$0xff]  ;;  %318 = vmatpush.msra.mxu1 %v297_v4  ;;  %v295_v6 = vld [vmem:[#allocation5 + $0xe8] sm:$0xff]  ;;  %v293_v7 = vld [vmem:[#allocation5 + $0xd8] sm:$0xff]  ;;  %s467_s14 = sshll.u32 %s463_s11, 4  ;;  %s453_s19 = scalar_lea.sflag [#allocation4], %s1011_s28  ;;  %s468_s14 = int_to_ptr.hbm [resolvable:$true] %s467_s14 }
  0x3a   : > { %299 = vmatpush.msra.mxu0 %v294_v1  ;;  %v286_v8 = vld [vmem:[#allocation5 + $0xa0] sm:$0xff]  ;;  %v291_v9 = vld [vmem:[#allocation5 + $0xc8] sm:$0xff]  ;;  %v284_v10 = vld [vmem:[#allocation5 + $0x90] sm:$0xff]  ;;  %s810_s21 = sshra.s32 %s468_s14, 4  ;;  %s816_s5 = scalar_lea.hbm %s1071_s4, 16  ;;  %s811_s21 = int_to_ptr.hbm [resolvable:$true] %s810_s21 }
  0x3b   : > { %319 = vmatpush.msra.mxu1 %v295_v6  ;;  %v289_v11 = vld [vmem:[#allocation5 + $0xb8] sm:$0xff]  ;;  %v282_v12 = vld [vmem:[#allocation5 + $0x80] sm:$0xff]  ;;  %v287_v13 = vld [vmem:[#allocation5 + $0xa8] sm:$0xff]  ;;  %s812_s24 = scalar_lea.hbm %s811_s21, 8  ;;  %p817_p12 = scmp.lt.s32.totalorder %s811_s21, %s1071_s4 }
  0x3c   : > { %300 = vmatpush.msra.mxu0 %v292_v2  ;;  %v280_v14 = vld [vmem:[#allocation5 + $0x70] sm:$0xff]  ;;  %v285_v15 = vld [vmem:[#allocation5 + $0x98] sm:$0xff]  ;;  %v278_v16 = vld [vmem:[#allocation5 + $0x60] sm:$0xff]  ;;  %p813_p1 = scmp.ne.s32.totalorder %s811_s21, %s812_s24  ;;  %p818_p8 = scmp.lt.s32.totalorder %s816_s5, %s812_s24 }
  0x3d   : > { %320 = vmatpush.msra.mxu1 %v293_v7  ;;  %v283_v17 = vld [vmem:[#allocation5 + $0x88] sm:$0xff]  ;;  %v276_v18 = vld [vmem:[#allocation5 + $0x50] sm:$0xff]  ;;  %v281_v19 = vld [vmem:[#allocation5 + $0x78] sm:$0xff] }
  0x3e   : > { %301 = vmatpush.msra.mxu0 %v290_v3  ;;  %v274_v20 = vld [vmem:[#allocation5 + $0x40] sm:$0xff]  ;;  %v279_v21 = vld [vmem:[#allocation5 + $0x68] sm:$0xff]  ;;  %v272_v22 = vld [vmem:[#allocation5 + $0x30] sm:$0xff]  ;;  %p814_p3 = pnand %p813_p1, %p980_p13  ;;  %p819_p7 = por %p818_p8, %p817_p12 }
  0x3f   : > { %321 = vmatpush.msra.mxu1 %v291_v9  ;;  %v277_v23 = vld [vmem:[#allocation5 + $0x58] sm:$0xff]  ;;  %v270_v24 = vld [vmem:[#allocation5 + $0x20] sm:$0xff]  ;;  %v275_v25 = vld [vmem:[#allocation5 + $0x48] sm:$0xff] }
  0x40   : > { %302 = vmatpush.msra.mxu0 %v288_v5  ;;  %v268_v26 = vld [vmem:[#allocation5 + $0x10] sm:$0xff]  ;;  %v273_v27 = vld [vmem:[#allocation5 + $0x38] sm:$0xff]  ;;  %v266_v28 = vld [vmem:[#allocation5] sm:$0xff]  ;;  %p815_p5 = pneg %p814_p3 }
  0x41   : > { %322 = vmatpush.msra.mxu1 %v289_v11  ;;  %v265_v29 = vld [vmem:[%s1017_s10] sm:$0xff]  ;;  %v271_v30 = vld [vmem:[#allocation5 + $0x28] sm:$0xff]  ;;  %v371_v36 = vld [vmem:[#allocation7 + $0x60] sm:$0xff] }
  0x42   : > { %303 = vmatpush.msra.mxu0 %v286_v8  ;;  %v269_v31 = vld [vmem:[#allocation5 + $0x18] sm:$0xff]  ;;  %v267_v32 = vld [vmem:[#allocation5 + $0x8] sm:$0xff]  ;;  %v373_v34 = vld [vmem:[#allocation7 + $0x70] sm:$0xff]  ;;  %p820_p9 = pnand %p819_p7, %p815_p5 }
  0x43   : > { %323 = vmatpush.msra.mxu1 %v287_v13  ;;  %v374_v33 = vld [vmem:[#allocation7 + $0x78] sm:$0xff]  ;;  %v372_v35 = vld [vmem:[#allocation7 + $0x68] sm:$0xff]  ;;  %v369_v38 = vld [vmem:[#allocation7 + $0x50] sm:$0xff] }
  0x44   : > { %304 = vmatpush.msra.mxu0 %v284_v10  ;;  %375 = vmatpush.msra.mxu2 %v374_v33  ;;  %v370_v37 = vld [vmem:[#allocation7 + $0x58] sm:$0xff]  ;;  %v368_v39 = vld [vmem:[#allocation7 + $0x48] sm:$0xff]  ;;  %v367_v40 = vld [vmem:[#allocation7 + $0x40] sm:$0xff] }
  0x45   : > { %324 = vmatpush.msra.mxu1 %v285_v15  ;;  %v366_v41 = vld [vmem:[#allocation7 + $0x38] sm:$0xff]  ;;  %v365_v42 = vld [vmem:[#allocation7 + $0x30] sm:$0xff]  ;;  %v364_v43 = vld [vmem:[#allocation7 + $0x28] sm:$0xff] }
  0x46   : > { %305 = vmatpush.msra.mxu0 %v282_v12  ;;  %376 = vmatpush.msra.mxu2 %v373_v34  ;;  %v363_v44 = vld [vmem:[#allocation7 + $0x20] sm:$0xff]  ;;  %v362_v45 = vld [vmem:[#allocation7 + $0x18] sm:$0xff]  ;;  %v361_v46 = vld [vmem:[#allocation7 + $0x10] sm:$0xff] }
  0x47   : > { %325 = vmatpush.msra.mxu1 %v283_v17  ;;  %v360_v47 = vld [vmem:[#allocation7 + $0x8] sm:$0xff]  ;;  %v359_v48 = vld [vmem:[#allocation7] sm:$0xff]  ;;  %v430_v2 = vld [vmem:[#allocation8 + $0x78] sm:$0xff] }
  0x48   : > { %306 = vmatpush.msra.mxu0 %v280_v14  ;;  %377 = vmatpush.msra.mxu2 %v372_v35  ;;  %v429_v3 = vld [vmem:[#allocation8 + $0x70] sm:$0xff]  ;;  %v428_v4 = vld [vmem:[#allocation8 + $0x68] sm:$0xff]  ;;  %v427_v5 = vld [vmem:[#allocation8 + $0x60] sm:$0xff] }
  0x49   : > { %326 = vmatpush.msra.mxu1 %v281_v19  ;;  %431 = vmatpush.msra.mxu3 %v430_v2  ;;  %v426_v6 = vld [vmem:[#allocation8 + $0x58] sm:$0xff]  ;;  %v425_v7 = vld [vmem:[#allocation8 + $0x50] sm:$0xff]  ;;  %v424_v8 = vld [vmem:[#allocation8 + $0x48] sm:$0xff] }
  0x4a   : > { %307 = vmatpush.msra.mxu0 %v278_v16  ;;  %378 = vmatpush.msra.mxu2 %v371_v36  ;;  %v423_v9 = vld [vmem:[#allocation8 + $0x40] sm:$0xff]  ;;  %v422_v10 = vld [vmem:[#allocation8 + $0x38] sm:$0xff]  ;;  %v421_v11 = vld [vmem:[#allocation8 + $0x30] sm:$0xff] }
  0x4b   : > { %327 = vmatpush.msra.mxu1 %v279_v21  ;;  %432 = vmatpush.msra.mxu3 %v429_v3  ;;  %v420_v12 = vld [vmem:[#allocation8 + $0x28] sm:$0xff]  ;;  %v419_v13 = vld [vmem:[#allocation8 + $0x20] sm:$0xff]  ;;  %v418_v14 = vld [vmem:[#allocation8 + $0x18] sm:$0xff] }
  0x4c   : > { %308 = vmatpush.msra.mxu0 %v276_v18  ;;  %379 = vmatpush.msra.mxu2 %v370_v37  ;;  %v417_v15 = vld [vmem:[#allocation8 + $0x10] sm:$0xff]  ;;  %v416_v16 = vld [vmem:[#allocation8 + $0x8] sm:$0xff]  ;;  %v415_v17 = vld [vmem:[#allocation8] sm:$0xff] }
  0x4d   : > { %328 = vmatpush.msra.mxu1 %v277_v23  ;;  %433 = vmatpush.msra.mxu3 %v428_v4 }
  0x4e   : > { %309 = vmatpush.msra.mxu0 %v274_v20  ;;  %380 = vmatpush.msra.mxu2 %v369_v38 }
  0x4f   : > { %329 = vmatpush.msra.mxu1 %v275_v25  ;;  %434 = vmatpush.msra.mxu3 %v427_v5 }
  0x50   : > { %310 = vmatpush.msra.mxu0 %v272_v22  ;;  %381 = vmatpush.msra.mxu2 %v368_v39 }
  0x51   : > { %330 = vmatpush.msra.mxu1 %v273_v27  ;;  %435 = vmatpush.msra.mxu3 %v426_v6 }
  0x52   : > { %311 = vmatpush.msra.mxu0 %v270_v24  ;;  %382 = vmatpush.msra.mxu2 %v367_v40 }
  0x53   : > { %331 = vmatpush.msra.mxu1 %v271_v30  ;;  %436 = vmatpush.msra.mxu3 %v425_v7 }
  0x54   : > { %312 = vmatpush.msra.mxu0 %v268_v26  ;;  %383 = vmatpush.msra.mxu2 %v366_v41 }
  0x55   : > { %332 = vmatpush.msra.mxu1 %v269_v31  ;;  %437 = vmatpush.msra.mxu3 %v424_v8 }
  0x56   : > { %313 = vmatpush.msra.mxu0 %v266_v28  ;;  %384 = vmatpush.msra.mxu2 %v365_v42 }
  0x57   : > { %314 = vmatmul.f32.vlgmr.msra.gmra.mxu0 %v265_v29  ;;  %333 = vmatpush.msra.mxu1 %v267_v32 }
  0x58   : > { %334 = vmatmul.f32.vlgmr.msra.gmra.mxu1 %v265_v29  ;;  %385 = vmatpush.msra.mxu2 %v364_v43 }
  0x59   : > { %438 = vmatpush.msra.mxu3 %v423_v9 }
  0x5a   : > { %386 = vmatpush.msra.mxu2 %v363_v44 }
  0x5b   : > { %439 = vmatpush.msra.mxu3 %v422_v10 }
  0x5c   : > { %387 = vmatpush.msra.mxu2 %v362_v45 }
  0x5d   : > { %440 = vmatpush.msra.mxu3 %v421_v11 }
  0x5e   : > { %388 = vmatpush.msra.mxu2 %v361_v46 }
  0x5f   : > { %441 = vmatpush.msra.mxu3 %v420_v12 }
  0x60   : > { %389 = vmatpush.msra.mxu2 %v360_v47 }
  0x61   : > { %442 = vmatpush.msra.mxu3 %v419_v13 }
  0x62   : > { %390 = vmatpush.msra.mxu2 %v359_v48 }
  0x63   : > { %443 = vmatpush.msra.mxu3 %v418_v14 }
  0x65   : > { %444 = vmatpush.msra.mxu3 %v417_v15 }
  0x67   : > { %445 = vmatpush.msra.mxu3 %v416_v16 }
  0x69   : > { %446 = vmatpush.msra.mxu3 %v415_v17 }
  0xd4   : > { %v315_v49 = vpop.f32.mrf.mxu0 }
  0xd5   : > { %v581_v50 = vmul.f32 -1.442695, %v315_v49  ;;  %v335_v63 = vpop.f32.mrf.mxu1 }
  0xd7   : > { %668 = vpow2.f32 %v581_v50 }
  0xdd   : > { %v669_v51 = vpop.eup %668 }
  0xde   : > { %v341_v52 = vadd.f32 1.0, %v669_v51 }
  0xe0   : > { %670 = vrcp.f32 %v341_v52  ;;  %v353_v56 = vand.u32 2147483648, %v341_v52  ;;  %v351_v58 = vand.u32 2147483647, %v341_v52  ;;  %vm347_vm1 = vweird.f32 %v341_v52 }
  0xe2   : > { %v354_v60 = vor.u32 1.1754944e-38, %v353_v56  ;;  %vm352_vm3 = vcmp.eq.f32.partialorder %v351_v58, 8.507059e+37 }
  0xe6   : > { %v671_v53 = vpop.eup %670 }
  0xe7   : > { %v343_v54 = vmul.f32 %v671_v53, %v341_v52  ;;  %vm348_vm0 = vweird.f32 %v671_v53 }
  0xe8   : > { %vm349_vm2 = vmor %vm347_vm1, %vm348_vm0 }
  0xe9   : > { %v344_v55 = vsub.f32 1.0, %v343_v54 }
  0xeb   : > { %v345_v57 = vmul.f32 %v671_v53, %v344_v55 }
  0xed   : > { %v346_v59 = vadd.f32 %v671_v53, %v345_v57 }
  0xef   : > { %v350_v61 = vsel %vm349_vm2, %v671_v53, %v346_v59 }
  0xf0   : > { %v355_v62 = vsel %vm352_vm3, %v354_v60, %v350_v61 }
  0xf1   : > { %v357_v0 = vmul.f32 %v355_v62, %v315_v49 }
  0xf3   : > { %v358_v1 = vmul.f32 %v357_v0, %v335_v63 }
  0xf5   : > { %391 = vmatmul.f32.vlgmr.msra.gmra.mxu2 %v358_v1 }
 0x178   : > { %v392_v18 = vpop.f32.mrf.mxu2 }
 0x179   : > { %v582_v19 = vmul.f32 -1.442695, %v392_v18 }
 0x17b   : > { %672 = vpow2.f32 %v582_v19 }
 0x181   : > { %v673_v20 = vpop.eup %672 }
 0x182   : > { %v398_v21 = vadd.f32 1.0, %v673_v20 }
 0x184   : > { %674 = vrcp.f32 %v398_v21  ;;  %v410_v25 = vand.u32 2147483648, %v398_v21  ;;  %v408_v27 = vand.u32 2147483647, %v398_v21  ;;  %vm404_vm5 = vweird.f32 %v398_v21 }
 0x186   : > { %v411_v29 = vor.u32 1.1754944e-38, %v410_v25  ;;  %vm409_vm7 = vcmp.eq.f32.partialorder %v408_v27, 8.507059e+37 }
 0x18a   : > { %v675_v22 = vpop.eup %674 }
 0x18b   : > { %v400_v23 = vmul.f32 %v675_v22, %v398_v21  ;;  %vm405_vm4 = vweird.f32 %v675_v22 }
 0x18c   : > { %vm406_vm6 = vmor %vm404_vm5, %vm405_vm4 }
 0x18d   : > { %v401_v24 = vsub.f32 1.0, %v400_v23 }
 0x18f   : > { %v402_v26 = vmul.f32 %v675_v22, %v401_v24 }
 0x191   : > { %v403_v28 = vadd.f32 %v675_v22, %v402_v26 }
 0x193   : > { %v407_v30 = vsel %vm406_vm6, %v675_v22, %v403_v28 }
 0x194   : > { %v412_v31 = vsel %vm409_vm7, %v411_v29, %v407_v30 }
 0x195   : > { %v414_v32 = vmul.f32 %v412_v31, %v392_v18 }
 0x197   : > { %447 = vmatmul.f32.vlgmr.msra.gmra.mxu3 %v414_v32 }
 0x21a   : > { %v448_v33 = vpop.f32.mrf.mxu3 }
 0x21b   : > { %451 = vst [vmem:[%s264_s12] sm:$0xff] %v448_v33 }
 0x21c   : > { %823 = shalt.err (!%p820_p9)
}
 0x21d   : > { %601 = dma.vmem_to_hbm [thread:$0]  (%p980_p13), %s466_s13, 128, %s468_s14, %s453_s19  }
 0x21e PF: > { %s479_s28 = sand.u32 1, %s858_s15   ;;  %p1078_p10 = scmp.ge.s32.totalorder %s870_s18, 2 }
 0x21f   : > { %s480_s8 = scalar_lea.sflag [#allocation4], %s479_s28 }
 0x220   : > { %p618_p11 = pnand %p1078_p10, %p985_p4 }
 0x222   : > { %p619_p0 = pneg %p618_p11 }
 0x224   : > { %853 = dma.done.wait (%p619_p0), %s480_s8, 128  }
 0x225   : > { %855 = vsyncadd (%p619_p0), %s480_s8, 4294967168  ;;  %p19_p2 = scmp.ge.s32.totalorder %s960_s20, 4   ;;  %s1079_s15 = smov %s862_s16 }
 0x226   : > { %s1080_s16 = smov %s866_s17  ;;  %s1081_s17 = smov %s972_s25 }
 0x227   : > { %s1082_s18 = smov %s960_s20  ;;  %21 = sbr.rel (!%p19_p2) target bundleno = 7 (0x7), region = 93 }
 0x22c   :  { %486 = vsyncpa [#allocation3], 1 }
 0x22d   :  { %488 = vsyncpa [#allocation3 + $0x1], 1 }
 0x22e   :  { %489 = vsyncpa [#allocation6], 1 }
 0x22f   :  { %490 = vsyncpa [#allocation9], 1 }
 0x230   :  { %491 = vsyncpa [#allocation4], 1 }
 0x231   :  { %493 = vsyncpa [#allocation4 + $0x1], 1 }

// kernel: tpu_custom_call.1
= control target key start
LH: loop header
LB: loop body
LE: loop exit
PB: predicated region body
PF: predicated region fallthrough
CT: control target
= control target key end

     0   :  { %9 = vsyncpa [#allocation3], 0  ;;  %s1067_s0 = inlined_call_operand.hbm [shape: f32[16,128], index: 0, kind: input, shape index: {}]   ;;  %s1068_s1 = inlined_call_operand.hbm [shape: f32[128,256], index: 1, kind: input, shape index: {}]   ;;  %s1069_s2 = inlined_call_operand.hbm [shape: f32[128,128], index: 2, kind: input, shape index: {}]   ;;  %s1070_s3 = inlined_call_operand.hbm [shape: f32[128,128], index: 3, kind: input, shape index: {}]   ;;  %s1071_s4 = inlined_call_operand.hbm [shape: f32[16,128], index: 4, kind: output, shape index: {}]  }
   0x1   :  { %11 = vsyncpa [#allocation3 + $0x1], 0 }
   0x2   :  { %12 = vsyncpa [#allocation6], 0 }
   0x3   :  { %13 = vsyncpa [#allocation9], 0 }
   0x4   :  { %14 = vsyncpa [#allocation4], 0 }
   0x5   :  { %16 = vsyncpa [#allocation4 + $0x1], 0  ;;  %s904_s15 = smov 0   ;;  %s906_s16 = smov 0  }
   0x6   :  { %s908_s17 = smov 0   ;;  %s910_s18 = smov 0  }
   0x7 LB: > { %s153_s21 = sshll.u32 %s1068_s1, 4  ;;  %s928_s22 = sadd.s32 4294967295, %s870_s18   ;;  %s870_s18 = sphi %s910_s18, %s1082_s18   ;;  %s866_s17 = sphi %s908_s17, %s1081_s17   ;;  %s862_s16 = sphi %s906_s16, %s1080_s16   ;;  %s858_s15 = sphi %s904_s15, %s1079_s15   ;;  %s154_s21 = int_to_ptr.hbm [resolvable:$true] %s153_s21 }
   0x8   : > { %p568_p0 = scmp.ge.s32.totalorder %s870_s18, 1  ;;  %p43_p1 = scmp.eq.s32.totalorder %s928_s22, 0 }
   0x9   : > { %p142_p2 = scmp.lt.s32.totalorder %s870_s18, 3  ;;  %s872_s24 = smov [#allocation5]  }
   0xa   : > { %s155_s25 = sshll.u32 %s872_s24, 4  ;;  %s167_s28 = sshll.u32 %s1069_s2, 4  ;;  %s156_s25 = int_to_ptr.vmem [resolvable:$true] %s155_s25  ;;  %s168_s28 = int_to_ptr.hbm [resolvable:$true] %s167_s28 }
   0xb   : > { %p933_p3 = pnand %p568_p0, %p142_p2  ;;  %s873_s30 = smov [#allocation7]  }
   0xc   : > { %s169_s5 = sshll.u32 %s873_s30, 4  ;;  %s874_s6 = smov 256   ;;  %s170_s5 = int_to_ptr.vmem [resolvable:$true] %s169_s5 }
   0xd   : > { %p603_p4 = pneg %p933_p3  ;;  %s875_s7 = smov 16  }
   0xe   : > { %s876_s8 = smov 128   ;;  %s877_s9 = smov 8  }
   0xf   : > { %p945_p6 = pnand %p603_p4, %p43_p1  ;;  %s181_s12 = sshll.u32 %s1070_s3, 4  ;;  %s182_s12 = int_to_ptr.hbm [resolvable:$true] %s181_s12 }
  0x10   : > { %s878_s13 = smov [#allocation8]   ;;  %s567_s19 = sadd.s32 4294967294, %s870_s18  }
  0x11   : > { %606 = dma.hbm_to_vmem [thread:$0]  (!%p945_p6), %s154_s21, 4096, %s156_s25, [#allocation6], %s874_s6, %s874_s6, %s875_s7  }
  0x12   : > { %609 = dma.hbm_to_vmem [thread:$0]  (!%p945_p6), %s168_s28, 2048, %s170_s5, [#allocation6], %s876_s8, %s876_s8, %s877_s9  }
  0x13   : > { %s183_s14 = sshll.u32 %s878_s13, 4  ;;  %s960_s20 = sadd.s32 1, %s870_s18   ;;  %s184_s14 = int_to_ptr.vmem [resolvable:$true] %s183_s14 }
  0x14   : > { %612 = dma.hbm_to_vmem [thread:$0]  (!%p945_p6), %s182_s12, 2048, %s184_s14, [#allocation9], %s876_s8, %s876_s8, %s877_s9  }
  0x15   : > { %s29_s21 = sadd.s32 1, %s866_s17  ;;  %s26_s24 = ssub.s32 %s870_s18, %s960_s20 }
  0x16   : > { %p36_p7 = scmp.ne.s32.totalorder %s866_s17, %s862_s16  ;;  %p27_p8 = scmp.eq.s32.totalorder %s26_s24, 0 }
  0x17   : > { %p37_p9 = scmp.eq.s32.totalorder %s870_s18, 0  ;;  %p42_p10 = scmp.ne.s32.totalorder %s862_s16, %s858_s15 }
  0x18   : > { %p129_p11 = scmp.eq.s32.totalorder %s928_s22, 1  ;;  %p135_p0 = scmp.eq.s32.totalorder %s567_s19, 1 }
  0x19   : > { %s972_s25 = scalar_select %p27_p8, %s866_s17, %s29_s21  }
  0x1a   : > { %p976_p12 = por %p43_p1, %p42_p10  ;;  %p980_p13 = por %p129_p11, %p36_p7 }
  0x1b   : > { %p38_p2 = por %p37_p9, %p36_p7  ;;  %s197_s28 = sand.u32 1, %s866_s17  }
  0x1c   : > { %p985_p4 = por %p135_p0, %p42_p10  ;;  %p624_p6 = scmp.lt.s32.totalorder %s870_s18, 2 }
  0x1d   : > { %s573_s30 = sshll.u32 %s197_s28, 3  ;;  %s574_s5 = sshll.u32 %s870_s18, 3 }
  0x1e   : > { %s205_s8 = scalar_lea.hbm %s1067_s0, %s574_s5  ;;  %s201_s10 = scalar_lea.vmem [#allocation2], %s573_s30 }
  0x1f   : > { %s207_s9 = sshll.u32 %s205_s8, 4  ;;  %s209_s11 = sshll.u32 %s201_s10, 4  ;;  %s208_s9 = int_to_ptr.hbm [resolvable:$true] %s207_s9  ;;  %s210_s11 = int_to_ptr.vmem [resolvable:$true] %s209_s11 }
  0x20   : > { %p994_p8 = pnand %p624_p6, %p38_p2  ;;  %s198_s13 = scalar_lea.sflag [#allocation3], %s197_s28 }
  0x21   : > { %s766_s14 = sshra.s32 %s208_s9, 4  ;;  %s773_s30 = scalar_lea.hbm %s1067_s0, 16  ;;  %s767_s14 = int_to_ptr.hbm [resolvable:$true] %s766_s14 }
  0x22   : > { %s768_s19 = scalar_lea.hbm %s767_s14, 8  ;;  %p770_p9 = pneg %p994_p8 }
  0x23   : > { %p769_p7 = scmp.ne.s32.totalorder %s767_s14, %s768_s19  ;;  %p774_p0 = scmp.lt.s32.totalorder %s767_s14, %s1067_s0 }
  0x24   : > { %p775_p2 = scmp.lt.s32.totalorder %s773_s30, %s768_s19 }
  0x25   : > { %p771_p10 = pnand %p770_p9, %p769_p7 }
  0x26   : > { %p776_p6 = por %p775_p2, %p774_p0 }
  0x27   : > { %p772_p11 = pneg %p771_p10 }
  0x29   : > { %p777_p5 = pnand %p776_p6, %p772_p11 }
  0x2b   : > { %780 = shalt.err (!%p777_p5)
}
  0x2c   : > { %616 = dma.hbm_to_vmem [thread:$0]  (!%p994_p8), %s208_s9, 128, %s210_s11, %s198_s13  }
  0x2d   : > { %218 = sbr.rel (%p933_p3) target bundleno = 542 (0x21e), region = 36  ;;  %s1011_s28 = sand.u32 (!%p933_p3), 1, %s862_s16  }
  0x2e   : > { %s576_s7 = sshll.u32 (!%p933_p3), %s1011_s28, 3  ;;  %s221_s8 = scalar_lea.sflag (!%p933_p3), [#allocation3], %s1011_s28 }
  0x2f   : > { %s1017_s10 = scalar_lea.vmem (!%p933_p3), [#allocation2], %s576_s7 }
  0x32   : > { %841 = dma.done.wait (%p976_p12), %s221_s8, 128  }
  0x33   : > { %843 = vsyncadd (%p976_p12), %s221_s8, 4294967168 }
  0x34   : > { %845 = dma.done.wait (%p43_p1), [#allocation6], 6144  }
  0x35   : > { %847 = vsyncadd (%p43_p1), [#allocation6], 4294961152 }
  0x36   : > { %849 = dma.done.wait (%p43_p1), [#allocation9], 2048  }
  0x37   : > { %851 = vsyncadd (%p43_p1), [#allocation9], 4294965248  ;;  %v296_v0 = vld [vmem:[#allocation5 + $0xf0] sm:$0xff]  ;;  %v294_v1 = vld [vmem:[#allocation5 + $0xe0] sm:$0xff]  ;;  %s584_s23 = sshll.u32 %s928_s22, 3  ;;  %s264_s12 = scalar_lea.vmem [#allocation10], %s576_s7 }
  0x38   : > { %298 = vmatpush.msra.mxu0 %v296_v0  ;;  %v292_v2 = vld [vmem:[#allocation5 + $0xd0] sm:$0xff]  ;;  %v290_v3 = vld [vmem:[#allocation5 + $0xc0] sm:$0xff]  ;;  %v297_v4 = vld [vmem:[#allocation5 + $0xf8] sm:$0xff]  ;;  %s463_s11 = scalar_lea.hbm %s1071_s4, %s584_s23  ;;  %s465_s13 = sshll.u32 %s264_s12, 4  ;;  %s466_s13 = int_to_ptr.vmem [resolvable:$true] %s465_s13 }
  0x39   : > { %v288_v5 = vld [vmem:[#allocation5 + $0xb0] sm:$0xff]  ;;  %318 = vmatpush.msra.mxu1 %v297_v4  ;;  %v295_v6 = vld [vmem:[#allocation5 + $0xe8] sm:$0xff]  ;;  %v293_v7 = vld [vmem:[#allocation5 + $0xd8] sm:$0xff]  ;;  %s467_s14 = sshll.u32 %s463_s11, 4  ;;  %s453_s19 = scalar_lea.sflag [#allocation4], %s1011_s28  ;;  %s468_s14 = int_to_ptr.hbm [resolvable:$true] %s467_s14 }
  0x3a   : > { %299 = vmatpush.msra.mxu0 %v294_v1  ;;  %v286_v8 = vld [vmem:[#allocation5 + $0xa0] sm:$0xff]  ;;  %v291_v9 = vld [vmem:[#allocation5 + $0xc8] sm:$0xff]  ;;  %v284_v10 = vld [vmem:[#allocation5 + $0x90] sm:$0xff]  ;;  %s810_s21 = sshra.s32 %s468_s14, 4  ;;  %s816_s5 = scalar_lea.hbm %s1071_s4, 16  ;;  %s811_s21 = int_to_ptr.hbm [resolvable:$true] %s810_s21 }
  0x3b   : > { %319 = vmatpush.msra.mxu1 %v295_v6  ;;  %v289_v11 = vld [vmem:[#allocation5 + $0xb8] sm:$0xff]  ;;  %v282_v12 = vld [vmem:[#allocation5 + $0x80] sm:$0xff]  ;;  %v287_v13 = vld [vmem:[#allocation5 + $0xa8] sm:$0xff]  ;;  %s812_s24 = scalar_lea.hbm %s811_s21, 8  ;;  %p817_p12 = scmp.lt.s32.totalorder %s811_s21, %s1071_s4 }
  0x3c   : > { %300 = vmatpush.msra.mxu0 %v292_v2  ;;  %v280_v14 = vld [vmem:[#allocation5 + $0x70] sm:$0xff]  ;;  %v285_v15 = vld [vmem:[#allocation5 + $0x98] sm:$0xff]  ;;  %v278_v16 = vld [vmem:[#allocation5 + $0x60] sm:$0xff]  ;;  %p813_p1 = scmp.ne.s32.totalorder %s811_s21, %s812_s24  ;;  %p818_p8 = scmp.lt.s32.totalorder %s816_s5, %s812_s24 }
  0x3d   : > { %320 = vmatpush.msra.mxu1 %v293_v7  ;;  %v283_v17 = vld [vmem:[#allocation5 + $0x88] sm:$0xff]  ;;  %v276_v18 = vld [vmem:[#allocation5 + $0x50] sm:$0xff]  ;;  %v281_v19 = vld [vmem:[#allocation5 + $0x78] sm:$0xff] }
  0x3e   : > { %301 = vmatpush.msra.mxu0 %v290_v3  ;;  %v274_v20 = vld [vmem:[#allocation5 + $0x40] sm:$0xff]  ;;  %v279_v21 = vld [vmem:[#allocation5 + $0x68] sm:$0xff]  ;;  %v272_v22 = vld [vmem:[#allocation5 + $0x30] sm:$0xff]  ;;  %p814_p3 = pnand %p813_p1, %p980_p13  ;;  %p819_p7 = por %p818_p8, %p817_p12 }
  0x3f   : > { %321 = vmatpush.msra.mxu1 %v291_v9  ;;  %v277_v23 = vld [vmem:[#allocation5 + $0x58] sm:$0xff]  ;;  %v270_v24 = vld [vmem:[#allocation5 + $0x20] sm:$0xff]  ;;  %v275_v25 = vld [vmem:[#allocation5 + $0x48] sm:$0xff] }
  0x40   : > { %302 = vmatpush.msra.mxu0 %v288_v5  ;;  %v268_v26 = vld [vmem:[#allocation5 + $0x10] sm:$0xff]  ;;  %v273_v27 = vld [vmem:[#allocation5 + $0x38] sm:$0xff]  ;;  %v266_v28 = vld [vmem:[#allocation5] sm:$0xff]  ;;  %p815_p5 = pneg %p814_p3 }
  0x41   : > { %322 = vmatpush.msra.mxu1 %v289_v11  ;;  %v265_v29 = vld [vmem:[%s1017_s10] sm:$0xff]  ;;  %v271_v30 = vld [vmem:[#allocation5 + $0x28] sm:$0xff]  ;;  %v371_v36 = vld [vmem:[#allocation7 + $0x60] sm:$0xff] }
  0x42   : > { %303 = vmatpush.msra.mxu0 %v286_v8  ;;  %v269_v31 = vld [vmem:[#allocation5 + $0x18] sm:$0xff]  ;;  %v267_v32 = vld [vmem:[#allocation5 + $0x8] sm:$0xff]  ;;  %v373_v34 = vld [vmem:[#allocation7 + $0x70] sm:$0xff]  ;;  %p820_p9 = pnand %p819_p7, %p815_p5 }
  0x43   : > { %323 = vmatpush.msra.mxu1 %v287_v13  ;;  %v374_v33 = vld [vmem:[#allocation7 + $0x78] sm:$0xff]  ;;  %v372_v35 = vld [vmem:[#allocation7 + $0x68] sm:$0xff]  ;;  %v369_v38 = vld [vmem:[#allocation7 + $0x50] sm:$0xff] }
  0x44   : > { %304 = vmatpush.msra.mxu0 %v284_v10  ;;  %375 = vmatpush.msra.mxu2 %v374_v33  ;;  %v370_v37 = vld [vmem:[#allocation7 + $0x58] sm:$0xff]  ;;  %v368_v39 = vld [vmem:[#allocation7 + $0x48] sm:$0xff]  ;;  %v367_v40 = vld [vmem:[#allocation7 + $0x40] sm:$0xff] }
  0x45   : > { %324 = vmatpush.msra.mxu1 %v285_v15  ;;  %v366_v41 = vld [vmem:[#allocation7 + $0x38] sm:$0xff]  ;;  %v365_v42 = vld [vmem:[#allocation7 + $0x30] sm:$0xff]  ;;  %v364_v43 = vld [vmem:[#allocation7 + $0x28] sm:$0xff] }
  0x46   : > { %305 = vmatpush.msra.mxu0 %v282_v12  ;;  %376 = vmatpush.msra.mxu2 %v373_v34  ;;  %v363_v44 = vld [vmem:[#allocation7 + $0x20] sm:$0xff]  ;;  %v362_v45 = vld [vmem:[#allocation7 + $0x18] sm:$0xff]  ;;  %v361_v46 = vld [vmem:[#allocation7 + $0x10] sm:$0xff] }
  0x47   : > { %325 = vmatpush.msra.mxu1 %v283_v17  ;;  %v360_v47 = vld [vmem:[#allocation7 + $0x8] sm:$0xff]  ;;  %v359_v48 = vld [vmem:[#allocation7] sm:$0xff]  ;;  %v430_v2 = vld [vmem:[#allocation8 + $0x78] sm:$0xff] }
  0x48   : > { %306 = vmatpush.msra.mxu0 %v280_v14  ;;  %377 = vmatpush.msra.mxu2 %v372_v35  ;;  %v429_v3 = vld [vmem:[#allocation8 + $0x70] sm:$0xff]  ;;  %v428_v4 = vld [vmem:[#allocation8 + $0x68] sm:$0xff]  ;;  %v427_v5 = vld [vmem:[#allocation8 + $0x60] sm:$0xff] }
  0x49   : > { %326 = vmatpush.msra.mxu1 %v281_v19  ;;  %431 = vmatpush.msra.mxu3 %v430_v2  ;;  %v426_v6 = vld [vmem:[#allocation8 + $0x58] sm:$0xff]  ;;  %v425_v7 = vld [vmem:[#allocation8 + $0x50] sm:$0xff]  ;;  %v424_v8 = vld [vmem:[#allocation8 + $0x48] sm:$0xff] }
  0x4a   : > { %307 = vmatpush.msra.mxu0 %v278_v16  ;;  %378 = vmatpush.msra.mxu2 %v371_v36  ;;  %v423_v9 = vld [vmem:[#allocation8 + $0x40] sm:$0xff]  ;;  %v422_v10 = vld [vmem:[#allocation8 + $0x38] sm:$0xff]  ;;  %v421_v11 = vld [vmem:[#allocation8 + $0x30] sm:$0xff] }
  0x4b   : > { %327 = vmatpush.msra.mxu1 %v279_v21  ;;  %432 = vmatpush.msra.mxu3 %v429_v3  ;;  %v420_v12 = vld [vmem:[#allocation8 + $0x28] sm:$0xff]  ;;  %v419_v13 = vld [vmem:[#allocation8 + $0x20] sm:$0xff]  ;;  %v418_v14 = vld [vmem:[#allocation8 + $0x18] sm:$0xff] }
  0x4c   : > { %308 = vmatpush.msra.mxu0 %v276_v18  ;;  %379 = vmatpush.msra.mxu2 %v370_v37  ;;  %v417_v15 = vld [vmem:[#allocation8 + $0x10] sm:$0xff]  ;;  %v416_v16 = vld [vmem:[#allocation8 + $0x8] sm:$0xff]  ;;  %v415_v17 = vld [vmem:[#allocation8] sm:$0xff] }
  0x4d   : > { %328 = vmatpush.msra.mxu1 %v277_v23  ;;  %433 = vmatpush.msra.mxu3 %v428_v4 }
  0x4e   : > { %309 = vmatpush.msra.mxu0 %v274_v20  ;;  %380 = vmatpush.msra.mxu2 %v369_v38 }
  0x4f   : > { %329 = vmatpush.msra.mxu1 %v275_v25  ;;  %434 = vmatpush.msra.mxu3 %v427_v5 }
  0x50   : > { %310 = vmatpush.msra.mxu0 %v272_v22  ;;  %381 = vmatpush.msra.mxu2 %v368_v39 }
  0x51   : > { %330 = vmatpush.msra.mxu1 %v273_v27  ;;  %435 = vmatpush.msra.mxu3 %v426_v6 }
  0x52   : > { %311 = vmatpush.msra.mxu0 %v270_v24  ;;  %382 = vmatpush.msra.mxu2 %v367_v40 }
  0x53   : > { %331 = vmatpush.msra.mxu1 %v271_v30  ;;  %436 = vmatpush.msra.mxu3 %v425_v7 }
  0x54   : > { %312 = vmatpush.msra.mxu0 %v268_v26  ;;  %383 = vmatpush.msra.mxu2 %v366_v41 }
  0x55   : > { %332 = vmatpush.msra.mxu1 %v269_v31  ;;  %437 = vmatpush.msra.mxu3 %v424_v8 }
  0x56   : > { %313 = vmatpush.msra.mxu0 %v266_v28  ;;  %384 = vmatpush.msra.mxu2 %v365_v42 }
  0x57   : > { %314 = vmatmul.f32.vlgmr.msra.gmra.mxu0 %v265_v29  ;;  %333 = vmatpush.msra.mxu1 %v267_v32 }
  0x58   : > { %334 = vmatmul.f32.vlgmr.msra.gmra.mxu1 %v265_v29  ;;  %385 = vmatpush.msra.mxu2 %v364_v43 }
  0x59   : > { %438 = vmatpush.msra.mxu3 %v423_v9 }
  0x5a   : > { %386 = vmatpush.msra.mxu2 %v363_v44 }
  0x5b   : > { %439 = vmatpush.msra.mxu3 %v422_v10 }
  0x5c   : > { %387 = vmatpush.msra.mxu2 %v362_v45 }
  0x5d   : > { %440 = vmatpush.msra.mxu3 %v421_v11 }
  0x5e   : > { %388 = vmatpush.msra.mxu2 %v361_v46 }
  0x5f   : > { %441 = vmatpush.msra.mxu3 %v420_v12 }
  0x60   : > { %389 = vmatpush.msra.mxu2 %v360_v47 }
  0x61   : > { %442 = vmatpush.msra.mxu3 %v419_v13 }
  0x62   : > { %390 = vmatpush.msra.mxu2 %v359_v48 }
  0x63   : > { %443 = vmatpush.msra.mxu3 %v418_v14 }
  0x65   : > { %444 = vmatpush.msra.mxu3 %v417_v15 }
  0x67   : > { %445 = vmatpush.msra.mxu3 %v416_v16 }
  0x69   : > { %446 = vmatpush.msra.mxu3 %v415_v17 }
  0xd4   : > { %v315_v49 = vpop.f32.mrf.mxu0 }
  0xd5   : > { %v581_v50 = vmul.f32 -1.442695, %v315_v49  ;;  %v335_v63 = vpop.f32.mrf.mxu1 }
  0xd7   : > { %668 = vpow2.f32 %v581_v50 }
  0xdd   : > { %v669_v51 = vpop.eup %668 }
  0xde   : > { %v341_v52 = vadd.f32 1.0, %v669_v51 }
  0xe0   : > { %670 = vrcp.f32 %v341_v52  ;;  %v353_v56 = vand.u32 2147483648, %v341_v52  ;;  %v351_v58 = vand.u32 2147483647, %v341_v52  ;;  %vm347_vm1 = vweird.f32 %v341_v52 }
  0xe2   : > { %v354_v60 = vor.u32 1.1754944e-38, %v353_v56  ;;  %vm352_vm3 = vcmp.eq.f32.partialorder %v351_v58, 8.507059e+37 }
  0xe6   : > { %v671_v53 = vpop.eup %670 }
  0xe7   : > { %v343_v54 = vmul.f32 %v671_v53, %v341_v52  ;;  %vm348_vm0 = vweird.f32 %v671_v53 }
  0xe8   : > { %vm349_vm2 = vmor %vm347_vm1, %vm348_vm0 }
  0xe9   : > { %v344_v55 = vsub.f32 1.0, %v343_v54 }
  0xeb   : > { %v345_v57 = vmul.f32 %v671_v53, %v344_v55 }
  0xed   : > { %v346_v59 = vadd.f32 %v671_v53, %v345_v57 }
  0xef   : > { %v350_v61 = vsel %vm349_vm2, %v671_v53, %v346_v59 }
  0xf0   : > { %v355_v62 = vsel %vm352_vm3, %v354_v60, %v350_v61 }
  0xf1   : > { %v357_v0 = vmul.f32 %v355_v62, %v315_v49 }
  0xf3   : > { %v358_v1 = vmul.f32 %v357_v0, %v335_v63 }
  0xf5   : > { %391 = vmatmul.f32.vlgmr.msra.gmra.mxu2 %v358_v1 }
 0x178   : > { %v392_v18 = vpop.f32.mrf.mxu2 }
 0x179   : > { %v582_v19 = vmul.f32 -1.442695, %v392_v18 }
 0x17b   : > { %672 = vpow2.f32 %v582_v19 }
 0x181   : > { %v673_v20 = vpop.eup %672 }
 0x182   : > { %v398_v21 = vadd.f32 1.0, %v673_v20 }
 0x184   : > { %674 = vrcp.f32 %v398_v21  ;;  %v410_v25 = vand.u32 2147483648, %v398_v21  ;;  %v408_v27 = vand.u32 2147483647, %v398_v21  ;;  %vm404_vm5 = vweird.f32 %v398_v21 }
 0x186   : > { %v411_v29 = vor.u32 1.1754944e-38, %v410_v25  ;;  %vm409_vm7 = vcmp.eq.f32.partialorder %v408_v27, 8.507059e+37 }
 0x18a   : > { %v675_v22 = vpop.eup %674 }
 0x18b   : > { %v400_v23 = vmul.f32 %v675_v22, %v398_v21  ;;  %vm405_vm4 = vweird.f32 %v675_v22 }
 0x18c   : > { %vm406_vm6 = vmor %vm404_vm5, %vm405_vm4 }
 0x18d   : > { %v401_v24 = vsub.f32 1.0, %v400_v23 }
 0x18f   : > { %v402_v26 = vmul.f32 %v675_v22, %v401_v24 }
 0x191   : > { %v403_v28 = vadd.f32 %v675_v22, %v402_v26 }
 0x193   : > { %v407_v30 = vsel %vm406_vm6, %v675_v22, %v403_v28 }
 0x194   : > { %v412_v31 = vsel %vm409_vm7, %v411_v29, %v407_v30 }
 0x195   : > { %v414_v32 = vmul.f32 %v412_v31, %v392_v18 }
 0x197   : > { %447 = vmatmul.f32.vlgmr.msra.gmra.mxu3 %v414_v32 }
 0x21a   : > { %v448_v33 = vpop.f32.mrf.mxu3 }
 0x21b   : > { %451 = vst [vmem:[%s264_s12] sm:$0xff] %v448_v33 }
 0x21c   : > { %823 = shalt.err (!%p820_p9)
}
 0x21d   : > { %601 = dma.vmem_to_hbm [thread:$0]  (%p980_p13), %s466_s13, 128, %s468_s14, %s453_s19  }
 0x21e PF: > { %s479_s28 = sand.u32 1, %s858_s15   ;;  %p1078_p10 = scmp.ge.s32.totalorder %s870_s18, 2 }
 0x21f   : > { %s480_s8 = scalar_lea.sflag [#allocation4], %s479_s28 }
 0x220   : > { %p618_p11 = pnand %p1078_p10, %p985_p4 }
 0x222   : > { %p619_p0 = pneg %p618_p11 }
 0x224   : > { %853 = dma.done.wait (%p619_p0), %s480_s8, 128  }
 0x225   : > { %855 = vsyncadd (%p619_p0), %s480_s8, 4294967168  ;;  %p19_p2 = scmp.ge.s32.totalorder %s960_s20, 4   ;;  %s1079_s15 = smov %s862_s16 }
 0x226   : > { %s1080_s16 = smov %s866_s17  ;;  %s1081_s17 = smov %s972_s25 }
 0x227   : > { %s1082_s18 = smov %s960_s20  ;;  %21 = sbr.rel (!%p19_p2) target bundleno = 7 (0x7), region = 93 }
 0x22c   :  { %486 = vsyncpa [#allocation3], 1 }
 0x22d   :  { %488 = vsyncpa [#allocation3 + $0x1], 1 }
 0x22e   :  { %489 = vsyncpa [#allocation6], 1 }
 0x22f   :  { %490 = vsyncpa [#allocation9], 1 }
 0x230   :  { %491 = vsyncpa [#allocation4], 1 }
 0x231   :  { %493 = vsyncpa [#allocation4 + $0x1], 1 }

</bundles_post_ra>
